<compile_context>
chip_gen: v6e
topology: v6e:2x2x1
jax: 0.10.0
libtpu: 0.0.40
codegen_flags: <defaults>
</compile_context>

<pallas_src>
import jax
import jax.numpy as jnp
from jax.experimental import pallas as pl
from jax.experimental.pallas import tpu as pltpu


_LANE = 128
_SUBLANE = 8
_PAD_LOGIT = -1e9                       # pre-scale pad value for padded classes
_VMEM_BUFFER_BUDGET = 16 * 1024 * 1024  # conservative double-buffer budget (fits v7x)


def _round_up(x, m):
    return (x + m - 1) // m * m


def _pick_tile_n(n, c_pad, in_itemsize, pm_itemsize):
    # Double-buffered inputs + positive_mask dominate VMEM use.
    bytes_per_row = 2 * c_pad * (in_itemsize + pm_itemsize)
    t = _VMEM_BUFFER_BUDGET // max(bytes_per_row, 1)
    t = max(_SUBLANE, min(1024, t))
    t = (t // _SUBLANE) * _SUBLANE
    t = min(t, _round_up(n, _SUBLANE))
    return int(max(t, _SUBLANE))


def _make_kernel(scale, epsilon, n_actual, tile_n):
    one_minus_eps = 1.0 - epsilon
    inv_n = 1.0 / float(n_actual)

    def kernel(inputs_ref, targets_ref, pmask_ref, out_ref, acc_ref):
        step = pl.program_id(0)

        @pl.when(step == 0)
        def _init():
            acc_ref[...] = jnp.zeros_like(acc_ref)

        # ---- compute (narrow dtypes are widened to f32 here, in-register) ----
        x = inputs_ref[...].astype(jnp.float32) * scale          # (TILE_N, C_pad)
        tn, c_pad = x.shape

        # log-softmax along the class (lane) axis
        m = jnp.max(x, axis=1, keepdims=True)
        shifted = x - m
        lse = jnp.log(jnp.sum(jnp.exp(shifted), axis=1, keepdims=True))
        neg_log_probs = lse - shifted                             # = -log_softmax(x)

        # one-hot (identity) term folded: no identity_mask / mask temporaries
        tgt = targets_ref[...]                                    # (TILE_N, 1) int32
        col = jax.lax.broadcasted_iota(jnp.int32, (tn, c_pad), 1)
        iden_term = jnp.sum(jnp.where(col == tgt, neg_log_probs, 0.0),
                            axis=1, keepdims=True)                # (TILE_N, 1)

        pmask = pmask_ref[...].astype(jnp.float32)                # (TILE_N, C_pad)
        psum = jnp.sum(pmask, axis=1, keepdims=True)              # (TILE_N, 1)
        pm_term = jnp.sum(pmask * neg_log_probs, axis=1, keepdims=True)

        # epsilon / psum via reciprocal; the clamp avoids inf/nan on all-zero rows
        # (incl. batch-padding rows).  pl.reciprocal(..., approx=True) would move the
        # divide onto the EUP if ~1e-4 relative error is acceptable.
        inv_psum = pl.reciprocal(jnp.maximum(psum, 1e-30))
        row_loss = one_minus_eps * iden_term + (epsilon * pm_term) * inv_psum

        # zero out batch-padding rows
        row_id = step * tile_n + jax.lax.broadcasted_iota(jnp.int32, (tn, 1), 0)
        row_loss = jnp.where(row_id < n_actual, row_loss, 0.0)

        acc_ref[...] += jnp.sum(row_loss, axis=0, keepdims=True)  # (1, 1)

        @pl.when(step == pl.num_programs(0) - 1)
        def _finalize():
            out_ref[...] = acc_ref[...] * inv_n

    return kernel


def attr_aware_loss(inputs, targets, positive_mask, scale=16.0, epsilon=0.1,
                    tile_n=None):
    """inputs: (N, C) float (any float dtype); targets: (N,) int;
    positive_mask: (N, C) binary (int8/bool/float).  Returns scalar f32 loss."""
    n, c = inputs.shape
    c_pad = _round_up(c, _LANE)

    if tile_n is None:
        tile_n = _pick_tile_n(n, c_pad, inputs.dtype.itemsize,
                              positive_mask.dtype.itemsize)
    tile_n = int(tile_n)
    n_pad = _round_up(n, tile_n)
    grid = (n_pad // tile_n,)

    # Lane-dense class axis: pad C to a multiple of 128 (pad logits very negative so
    # exp underflows to 0; pad mask columns with 0).  Pad batch rows with zeros.
    if c_pad != c:
        inputs = jnp.pad(inputs, ((0, 0), (0, c_pad - c)),
                         constant_values=_PAD_LOGIT)
        positive_mask = jnp.pad(positive_mask, ((0, 0), (0, c_pad - c)))
    targets_2d = targets.reshape(n, 1).astype(jnp.int32)
    if n_pad != n:
        inputs = jnp.pad(inputs, ((0, n_pad - n), (0, 0)))
        positive_mask = jnp.pad(positive_mask, ((0, n_pad - n), (0, 0)))
        targets_2d = jnp.pad(targets_2d, ((0, n_pad - n), (0, 0)))

    kernel = _make_kernel(float(scale), float(epsilon), n, tile_n)

    bytes_accessed = (inputs.size * inputs.dtype.itemsize
                      + positive_mask.size * positive_mask.dtype.itemsize
                      + targets_2d.size * 4 + 4)
    cost = pl.CostEstimate(flops=int(10 * n_pad * c_pad),
                           transcendentals=int(n_pad * c_pad),
                           bytes_accessed=int(bytes_accessed))

    out = pl.pallas_call(
        kernel,
        out_shape=jax.ShapeDtypeStruct((1, 1), jnp.float32),
        grid_spec=pltpu.PrefetchScalarGridSpec(
            num_scalar_prefetch=0,
            grid=grid,
            in_specs=[
                pl.BlockSpec((tile_n, c_pad), lambda i: (i, 0)),   # inputs
                pl.BlockSpec((tile_n, 1), lambda i: (i, 0)),       # targets
                pl.BlockSpec((tile_n, c_pad), lambda i: (i, 0)),   # positive_mask
            ],
            out_specs=pl.BlockSpec((1, 1), lambda i: (0, 0)),
            scratch_shapes=[pltpu.VMEM((1, 1), jnp.float32)],
        ),
        compiler_params=pltpu.CompilerParams(
            dimension_semantics=("arbitrary",),     # output accumulates across tiles
            vmem_limit_bytes=32 * 1024 * 1024,
        ),
        cost_estimate=cost,
    )(inputs, targets_2d, positive_mask)
    return out[0, 0]


def attr_aware_loss_ref(inputs, targets, positive_mask, scale=16.0, epsilon=0.1):
    x = scale * inputs.astype(jnp.float32)
    log_probs = jax.nn.log_softmax(x, axis=1)
    identity = jax.nn.one_hot(targets, x.shape[1], dtype=jnp.float32)
    pm = positive_mask.astype(jnp.float32)
    psum = jnp.sum(pm, axis=1, keepdims=True)
    mask = (1.0 - epsilon) * identity + (epsilon / psum) * pm
    return jnp.sum(jnp.mean(-mask * log_probs, axis=0))


if __name__ == "__main__":
    key = jax.random.PRNGKey(0)
    k1, k2, k3 = jax.random.split(key, 3)

    # N=56 / C=32 exercises both batch-row padding (-> 64) and lane padding (-> 128),
    # and tile_n=32 gives a 2-step grid so the accumulator path is exercised.
    N, C = 56, 32
    inputs = jax.random.normal(k1, (N, C), dtype=jnp.float32)
    targets = jax.random.randint(k2, (N,), 0, C, dtype=jnp.int32)
    # binary positive mask carried as int8 (always contains the target class)
    rand_mask = (jax.random.uniform(k3, (N, C)) < 0.25).astype(jnp.int8)
    identity = jax.nn.one_hot(targets, C, dtype=jnp.int8)
    positive_mask = jnp.clip(rand_mask + identity, 0, 1).astype(jnp.int8)

    loss = attr_aware_loss(inputs, targets, positive_mask, scale=16.0, epsilon=0.1,
                           tile_n=32)
    loss = jax.block_until_ready(loss)

    ref = attr_aware_loss_ref(inputs, targets, positive_mask, scale=16.0, epsilon=0.1)
    assert jnp.allclose(loss, ref, rtol=1e-4, atol=1e-4), (loss, ref)

    print("KERNEL_OK")
</pallas_src>

<mosaic_0001>
module attributes {stable_mosaic.version = 11 : i64} {
  func.func @kernel(%arg0: i32, %arg1: memref<32x128xf32, #tpu.memory_space<vmem>>, %arg2: memref<32x1xi32, #tpu.memory_space<vmem>>, %arg3: memref<32x128xi8, #tpu.memory_space<vmem>>, %arg4: memref<1x1xf32, #tpu.memory_space<vmem>>, %arg5: memref<1x1xf32, #tpu.memory_space<vmem>>) attributes {dimension_semantics = [#tpu.dimension_semantics<arbitrary>], iteration_bounds = array<i64: 2>, scalar_prefetch = 0 : i64, scratch_operands = 1 : i64, tpu.core_type = #tpu.core_type<tc>, window_params = [{transform_indices = @transform_0, window_bounds = array<i64: 32, 128>}, {transform_indices = @transform_1, window_bounds = array<i64: 32, 1>}, {transform_indices = @transform_2, window_bounds = array<i64: 32, 128>}, {pipeline_mode = #tpu.pipeline_mode<synchronous>, transform_indices = @transform_3, window_bounds = array<i64: 1, 1>}]} {
    %c0_i32 = arith.constant 0 : i32
    %0 = arith.cmpi eq, %arg0, %c0_i32 : i32
    %1 = arith.extui %0 : i1 to i32
    %c0_i32_0 = arith.constant 0 : i32
    %2 = arith.cmpi ne, %1, %c0_i32_0 : i32
    scf.if %2 {
      %cst_22 = arith.constant 0.000000e+00 : f32
      %56 = vector.broadcast %cst_22 : f32 to vector<1x1xf32>
      %c0_23 = arith.constant 0 : index
      %c0_24 = arith.constant 0 : index
      %57 = vector.load %arg5[%c0_23, %c0_24] : memref<1x1xf32, #tpu.memory_space<vmem>>, vector<1x1xf32>
      tpu.vector_store %arg5[%c0_23, %c0_24], %56 {strides = array<i32>} : memref<1x1xf32, #tpu.memory_space<vmem>>, vector<1x1xf32>,
    } else {
    }
    %c0 = arith.constant 0 : index
    %c0_1 = arith.constant 0 : index
    %3 = vector.load %arg1[%c0, %c0_1] : memref<32x128xf32, #tpu.memory_space<vmem>>, vector<32x128xf32>
    %cst = arith.constant 1.600000e+01 : f32
    %4 = vector.broadcast %cst : f32 to vector<32x128xf32>
    %5 = arith.mulf %3, %4 : vector<32x128xf32>
    %cst_2 = arith.constant dense<0xFF800000> : vector<32xf32>
    %6 = vector.multi_reduction <maximumf>, %5, %cst_2 [1] : vector<32x128xf32> to vector<32xf32>
    %7 = vector.shape_cast %6 : vector<32xf32> to vector<32x1xf32>
    %8 = vector.broadcast %7 : vector<32x1xf32> to vector<32x128xf32>
    %9 = arith.subf %5, %8 : vector<32x128xf32>
    %10 = math.exp %9 : vector<32x128xf32>
    %cst_3 = arith.constant dense<0.000000e+00> : vector<32xf32>
    %11 = vector.multi_reduction <add>, %10, %cst_3 [1] : vector<32x128xf32> to vector<32xf32>
    %12 = vector.shape_cast %11 : vector<32xf32> to vector<32x1xf32>
    %13 = math.log %12 : vector<32x1xf32>
    %14 = vector.broadcast %13 : vector<32x1xf32> to vector<32x128xf32>
    %15 = arith.subf %14, %9 : vector<32x128xf32>
    %c0_4 = arith.constant 0 : index
    %c0_5 = arith.constant 0 : index
    %16 = vector.load %arg2[%c0_4, %c0_5] : memref<32x1xi32, #tpu.memory_space<vmem>>, vector<32x1xi32>
    %17 = tpu.iota {dimensions = array<i32: 1>} : vector<32x128xi32>
    %18 = vector.broadcast %16 : vector<32x1xi32> to vector<32x128xi32>
    %19 = arith.cmpi eq, %17, %18 : vector<32x128xi32>
    %cst_6 = arith.constant 0.000000e+00 : f32
    %20 = vector.broadcast %cst_6 : f32 to vector<32x128xf32>
    %21 = arith.select %19, %15, %20 : vector<32x128xi1>, vector<32x128xf32>
    %cst_7 = arith.constant dense<0.000000e+00> : vector<32xf32>
    %22 = vector.multi_reduction <add>, %21, %cst_7 [1] : vector<32x128xf32> to vector<32xf32>
    %23 = vector.shape_cast %22 : vector<32xf32> to vector<32x1xf32>
    %c0_8 = arith.constant 0 : index
    %c0_9 = arith.constant 0 : index
    %24 = vector.load %arg3[%c0_8, %c0_9] : memref<32x128xi8, #tpu.memory_space<vmem>>, vector<32x128xi8>
    %25 = arith.sitofp %24 : vector<32x128xi8> to vector<32x128xf32>
    %cst_10 = arith.constant dense<0.000000e+00> : vector<32xf32>
    %26 = vector.multi_reduction <add>, %25, %cst_10 [1] : vector<32x128xf32> to vector<32xf32>
    %27 = vector.shape_cast %26 : vector<32xf32> to vector<32x1xf32>
    %28 = arith.mulf %25, %15 : vector<32x128xf32>
    %cst_11 = arith.constant dense<0.000000e+00> : vector<32xf32>
    %29 = vector.multi_reduction <add>, %28, %cst_11 [1] : vector<32x128xf32> to vector<32xf32>
    %30 = vector.shape_cast %29 : vector<32xf32> to vector<32x1xf32>
    %cst_12 = arith.constant 1.000000e-30 : f32
    %31 = vector.broadcast %cst_12 : f32 to vector<32x1xf32>
    %32 = arith.maximumf %27, %31 : vector<32x1xf32>
    %33 = tpu.reciprocal %32 : vector<32x1xf32> -> vector<32x1xf32>
    %cst_13 = arith.constant 0.899999976 : f32
    %34 = vector.broadcast %cst_13 : f32 to vector<32x1xf32>
    %35 = arith.mulf %34, %23 : vector<32x1xf32>
    %cst_14 = arith.constant 1.000000e-01 : f32
    %36 = vector.broadcast %cst_14 : f32 to vector<32x1xf32>
    %37 = arith.mulf %36, %30 : vector<32x1xf32>
    %38 = arith.mulf %37, %33 : vector<32x1xf32>
    %39 = arith.addf %35, %38 : vector<32x1xf32>
    %c32_i32 = arith.constant 32 : i32
    %40 = arith.muli %arg0, %c32_i32 : i32
    %41 = tpu.iota {dimensions = array<i32: 0>} : vector<32x1xi32>
    %42 = vector.broadcast %40 : i32 to vector<32x1xi32>
    %43 = arith.addi %42, %41 : vector<32x1xi32>
    %c56_i32 = arith.constant 56 : i32
    %44 = vector.broadcast %c56_i32 : i32 to vector<32x1xi32>
    %45 = arith.cmpi slt, %43, %44 : vector<32x1xi32>
    %cst_15 = arith.constant 0.000000e+00 : f32
    %46 = vector.broadcast %cst_15 : f32 to vector<32x1xf32>
    %47 = arith.select %45, %39, %46 : vector<32x1xi1>, vector<32x1xf32>
    %c0_16 = arith.constant 0 : index
    %c0_17 = arith.constant 0 : index
    %48 = vector.load %arg5[%c0_16, %c0_17] : memref<1x1xf32, #tpu.memory_space<vmem>>, vector<1x1xf32>
    %cst_18 = arith.constant dense<0.000000e+00> : vector<1xf32>
    %49 = vector.multi_reduction <add>, %47, %cst_18 [0] : vector<32x1xf32> to vector<1xf32>
    %50 = vector.shape_cast %49 : vector<1xf32> to vector<1x1xf32>
    %51 = arith.addf %48, %50 : vector<1x1xf32>
    %c0_19 = arith.constant 0 : index
    %c0_20 = arith.constant 0 : index
    %52 = vector.load %arg5[%c0_19, %c0_20] : memref<1x1xf32, #tpu.memory_space<vmem>>, vector<1x1xf32>
    tpu.vector_store %arg5[%c0_19, %c0_20], %51 {strides = array<i32>} : memref<1x1xf32, #tpu.memory_space<vmem>>, vector<1x1xf32>,
    %c1_i32 = arith.constant 1 : i32
    %53 = arith.cmpi eq, %arg0, %c1_i32 : i32
    %54 = arith.extui %53 : i1 to i32
    %c0_i32_21 = arith.constant 0 : i32
    %55 = arith.cmpi ne, %54, %c0_i32_21 : i32
    scf.if %55 {
      %c0_22 = arith.constant 0 : index
      %c0_23 = arith.constant 0 : index
      %56 = vector.load %arg5[%c0_22, %c0_23] : memref<1x1xf32, #tpu.memory_space<vmem>>, vector<1x1xf32>
      %cst_24 = arith.constant 0.0178571437 : f32
      %57 = vector.broadcast %cst_24 : f32 to vector<1x1xf32>
      %58 = arith.mulf %56, %57 : vector<1x1xf32>
      %c0_25 = arith.constant 0 : index
      %c0_26 = arith.constant 0 : index
      %59 = vector.load %arg4[%c0_25, %c0_26] : memref<1x1xf32, #tpu.memory_space<vmem>>, vector<1x1xf32>
      tpu.vector_store %arg4[%c0_25, %c0_26], %58 {strides = array<i32>} : memref<1x1xf32, #tpu.memory_space<vmem>>, vector<1x1xf32>,
    } else {
    }
    return
  }
  func.func @transform_0(%arg0: i32) -> (i32, i32) {
    %c0_i32 = arith.constant 0 : i32
    %c0_i32_0 = arith.constant 0 : i32
    return %arg0, %c0_i32 : i32, i32
  }
  func.func @transform_1(%arg0: i32) -> (i32, i32) {
    %c0_i32 = arith.constant 0 : i32
    %c0_i32_0 = arith.constant 0 : i32
    return %arg0, %c0_i32 : i32, i32
  }
  func.func @transform_2(%arg0: i32) -> (i32, i32) {
    %c0_i32 = arith.constant 0 : i32
    %c0_i32_0 = arith.constant 0 : i32
    return %arg0, %c0_i32 : i32, i32
  }
  func.func @transform_3(%arg0: i32) -> (i32, i32) {
    %c0_i32 = arith.constant 0 : i32
    %c0_i32_0 = arith.constant 0 : i32
    %c0_i32_1 = arith.constant 0 : i32
    return %c0_i32, %c0_i32_0 : i32, i32
  }
}

</mosaic_0001>

<bundles_post_ra>
// kernel: tpu_custom_call.1
= control target key start
LH: loop header
LB: loop body
LE: loop exit
PB: predicated region body
PF: predicated region fallthrough
CT: control target
= control target key end

     0   :  { %8 = vsyncpa [#allocation4], 0  ;;  %s819_s0 = inlined_call_operand.vmem [shape: f32[64,128], index: 0, kind: input, shape index: {}]   ;;  %s820_s1 = inlined_call_operand.vmem [shape: s32[64,1], index: 1, kind: input, shape index: {}]   ;;  %s821_s2 = inlined_call_operand.hbm [shape: s8[64,128], index: 2, kind: input, shape index: {}]   ;;  %s822_s3 = inlined_call_operand.hbm [shape: f32[1,1], index: 3, kind: output, shape index: {}]  }
   0x1   :  { %10 = vsyncpa [#allocation4 + $0x1], 0 }
   0x2   :  { %11 = vsyncpa [#allocation5], 0  ;;  %s687_s12 = smov 0   ;;  %s689_s13 = smov 0  }
   0x3   :  { %s691_s14 = smov 0   ;;  %s693_s15 = smov 0  }
   0x4 LB: > { %s706_s16 = sadd.s32 4294967295, %s661_s15   ;;  %s709_s17 = sadd.s32 1, %s661_s15   ;;  %s661_s15 = sphi %s693_s15, %s832_s15   ;;  %s657_s14 = sphi %s691_s14, %s831_s14   ;;  %s653_s13 = sphi %s689_s13, %s830_s13   ;;  %s649_s12 = sphi %s687_s12, %s829_s12  }
   0x5   : > { %s73_s18 = ssub.s32 %s661_s15, %s709_s17  ;;  %s76_s19 = sadd.s32 1, %s657_s14 }
   0x6   : > { %p74_p0 = scmp.eq.s32.totalorder %s73_s18, 0  ;;  %p83_p1 = scmp.ne.s32.totalorder %s657_s14, %s653_s13 }
   0x7   : > { %p84_p2 = scmp.eq.s32.totalorder %s661_s15, 0  ;;  %p89_p3 = scmp.ne.s32.totalorder %s653_s13, %s649_s12 }
   0x8   : > { %s719_s20 = scalar_select %p74_p0, %s657_s14, %s76_s19  }
   0x9   : > { %p85_p4 = por %p84_p2, %p83_p1  ;;  %p90_p5 = scmp.eq.s32.totalorder %s706_s16, 0 }
   0xa   : > { %p507_p6 = scmp.lt.s32.totalorder %s661_s15, 2  ;;  %s152_s22 = sand.u32 1, %s657_s14  }
   0xb   : > { %p723_p7 = por %p90_p5, %p89_p3  ;;  %s482_s23 = sshll.u32 %s152_s22, 3 }
   0xc   : > { %s483_s24 = sshll.u32 %s661_s15, 7  ;;  %s156_s28 = scalar_lea.vmem [#allocation3], %s482_s23 }
   0xd   : > { %s824_s21 = scalar_select %p723_p7, 1, 0 }
   0xe   : > { %s732_s27 = scalar_lea.hbm %s821_s2, %s483_s24  ;;  %s163_s29 = sshll.u32 %s156_s28, 4  ;;  %s734_s29 = int_to_ptr.vmem [resolvable:$true] %s163_s29 }
   0xf   : > { %p736_p8 = pnand %p507_p6, %p85_p4  ;;  %s153_s4 = scalar_lea.sflag [#allocation4], %s152_s22 }
  0x10   : > { %s571_s5 = scalar_lea.hbm %s732_s27, 128  ;;  %s576_s8 = scalar_lea.hbm %s821_s2, 256 }
  0x11   : > { %p572_p11 = scmp.ne.s32.totalorder %s732_s27, %s571_s5  ;;  %p573_p12 = pneg %p736_p8 }
  0x12   : > { %p577_p1 = scmp.lt.s32.totalorder %s732_s27, %s821_s2  ;;  %p578_p2 = scmp.lt.s32.totalorder %s576_s8, %s571_s5 }
  0x13   : > { %p574_p13 = pnand %p573_p12, %p572_p11 }
  0x14   : > { %p579_p3 = por %p578_p2, %p577_p1 }
  0x15   : > { %p575_p0 = pneg %p574_p13 }
  0x17   : > { %p580_p4 = pnand %p579_p3, %p575_p0 }
  0x19   : > { %583 = shalt.err (!%p580_p4)
}
  0x1a   : > { %s584_s11 = scalar_lea.vmem %s734_s29, 128  ;;  %s663_s12 = smov [#allocation3]  }
  0x1b   : > { %p585_p5 = scmp.ne.s32.totalorder %s734_s29, %s584_s11  ;;  %s589_s18 = sshll.u32 %s663_s12, 4  ;;  %s590_s18 = int_to_ptr.vmem [resolvable:$false] %s589_s18 }
  0x1c   : > { %s591_s19 = scalar_lea.vmem %s590_s18, 256  ;;  %p592_p13 = scmp.lt.s32.totalorder %s734_s29, %s590_s18 }
  0x1d   : > { %p587_p6 = pnand %p585_p5, %p573_p12  ;;  %p593_p9 = scmp.lt.s32.totalorder %s591_s19, %s584_s11 }
  0x1f   : > { %p588_p11 = pneg %p587_p6  ;;  %p594_p10 = por %p593_p9, %p592_p13 }
  0x21   : > { %p595_p7 = pnand %p594_p10, %p588_p11 }
  0x23   : > { %598 = shalt.err (!%p595_p7)
}
  0x24   : > { %506 = dma.hbm_to_vmem [thread:$0]  (!%p736_p8), %s732_s27, 128, %s734_s29, %s153_s4  }
  0x25   : > { %p826_p0 = scmp.lt.s32.totalorder %s661_s15, 3  ;;  %p827_p1 = scmp.ge.s32.totalorder %s661_s15, 1 }
  0x27   : > { %p169_p12 = pnand %p827_p1, %p826_p0 }
  0x28   : > { %s174_s22 = sand.u32 (!%p169_p12), 1, %s653_s13   ;;  %p828_p7 = scmp.ne.s32.totalorder (!%p169_p12), %s824_s21, 0 }
  0x29   : > { %172 = sbr.rel (%p169_p12) target bundleno = 621 (0x26d), region = 32  ;;  %s765_s23 = sshll.u32 (!%p169_p12), %s174_s22, 3 }
  0x2a   : > { %s175_s24 = scalar_lea.sflag (!%p169_p12), [#allocation4], %s174_s22  ;;  %s178_s25 = scalar_lea.vmem (!%p169_p12), [#allocation3], %s765_s23 }
  0x2e   : > { %640 = dma.done.wait (%p828_p7), %s175_s24, 128  }
  0x2f   : > { %642 = vsyncadd (%p828_p7), %s175_s24, 4294967168  ;;  %s486_s26 = sshll.u32 %s706_s16, 2  ;;  %p490_p9 = scmp.ne.s32.totalorder %s706_s16, 0 }
  0x30   : > { %p207_p8 = scmp.lt.s32.totalorder %s486_s26, 7 }
  0x31   : > { %221 = sbr.rel (%p490_p9) target bundleno = 56 (0x38), region = 40 }
  0x32   : > { %s834_s26 = smov (!%p207_p8, %s486_s26), 7 }
  0x33   : > { %s487_s15 = sshll.u32 %s834_s26, 3 }
  0x34   : > { %s210_s29 = scalar_lea.vmem %s819_s0, %s487_s15  ;;  %s779_s5 = scalar_lea.vmem %s820_s1, %s487_s15 }
  0x36   : > { %vm222_vm0 = vcmask 0   ;;  %v664_v0 = vmov 0.0  }
  0x37   : > { %223 = vst.msk [vmem:[#allocation2] sm:$0x1] %vm222_vm0, %v664_v0 }
  0x38 PF: > { %v224_v1 = vld [vmem:[%s210_s29] sm:$0xff]  ;;  %v226_v2 = vld [vmem:[%s210_s29 + $0x10] sm:$0xff]  ;;  %v225_v3 = vld [vmem:[%s210_s29 + $0x8] sm:$0xff]  ;;  %v665_v9 = vmov 0   ;;  %v276_v42 = vlaneseq  ;;  %s491_s21 = sshll.u32 %s706_s16, 5  ;;  %vm389_vm9 = vcmask 0  }
  0x39   : > { %v228_v4 = vmul.f32 16.0, %v224_v1  ;;  %v230_v5 = vmul.f32 16.0, %v226_v2  ;;  %v227_v6 = vld [vmem:[%s210_s29 + $0x18] sm:$0xff]  ;;  %v229_v7 = vmul.f32 16.0, %v225_v3  ;;  %546 = vset.pattern.permute.xlu1 %v665_v9  ;;  %545 = vset.pattern.permute.xlu0 %v665_v9  ;;  %v273_v22 = vld [vmem:[%s779_s5 + $0x8] sm:$0xff]  ;;  %v274_v23 = vld [vmem:[%s779_s5 + $0x10] sm:$0xff] }
  0x3a   : > { %v231_v8 = vmul.f32 16.0, %v227_v6  ;;  %v272_v24 = vld [vmem:[%s779_s5] sm:$0xff]  ;;  %v275_v32 = vld [vmem:[%s779_s5 + $0x18] sm:$0xff]  ;;  %v277_v45 = vand.u32 127, %v276_v42  ;;  %p492_p10 = scmp.ne.s32.totalorder %s706_s16, 1 }
  0x3b   : > { %232 = vmax.xlane.f32.xlu0 %v228_v4  ;;  %236 = vmax.xlane.f32.xlu1 %v230_v5  ;;  %v306_v28 = vld [vmem:[%s178_s25] sm:$0xff] }
  0x3c   : > { %v308_v29 = vunpack.c.1.s8 %v306_v28  ;;  %v307_v33 = vunpack.c.0.s8 %v306_v28  ;;  %v309_v35 = vunpack.c.2.s8 %v306_v28  ;;  %v310_v37 = vunpack.c.3.s8 %v306_v28 }
  0x3e   : > { %v312_v30 = vcvt.s32.f32 %v308_v29  ;;  %v311_v34 = vcvt.s32.f32 %v307_v33  ;;  %v313_v36 = vcvt.s32.f32 %v309_v35  ;;  %v314_v38 = vcvt.s32.f32 %v310_v37 }
  0x3f   : > { %234 = vmax.xlane.f32.xlu0 %v229_v7  ;;  %238 = vmax.xlane.f32.xlu1 %v231_v8 }
  0xc4   : > { %v233_v10 = vpop.xlane.xlu0 %232  ;;  %v237_v11 = vpop.xlane.xlu1 %236 }
  0xc5   : > { %v240_v12 = vsub.f32 %v228_v4, %v233_v10  ;;  %v782_v13 = vsub.f32 %v230_v5, %v237_v11 }
  0xc7   : > { %v244_v14 = vmul.f32 1.442695, %v240_v12  ;;  %v248_v15 = vmul.f32 1.442695, %v782_v13 }
  0xc8   : > { %v235_v16 = vpop.xlane.xlu0 %234  ;;  %v239_v25 = vpop.xlane.xlu1 %238 }
  0xc9   : > { %547 = vpow2.f32 %v244_v14  ;;  %v241_v17 = vsub.f32 %v229_v7, %v235_v16  ;;  %v243_v26 = vsub.f32 %v231_v8, %v239_v25 }
  0xca   : > { %549 = vpow2.f32 %v248_v15 }
  0xcb   : > { %v246_v18 = vmul.f32 1.442695, %v241_v17  ;;  %v250_v27 = vmul.f32 1.442695, %v243_v26 }
  0xcd   : > { %551 = vpow2.f32 %v246_v18 }
  0xce   : > { %553 = vpow2.f32 %v250_v27 }
  0xd6   : > { %v548_v19 = vpop.eup %547 }
  0xd7   : > { %252 = vadd.xlane.f32.xlu0 %v548_v19  ;;  %v550_v20 = vpop.eup %549 }
  0xda   : > { %v552_v21 = vpop.eup %551 }
  0xdb   : > { %256 = vadd.xlane.f32.xlu0 %v550_v20  ;;  %254 = vadd.xlane.f32.xlu1 %v552_v21  ;;  %v554_v31 = vpop.eup %553 }
  0xec   : > { %282 = vperm.xlu1 %546, %v273_v22  }
  0xf0   : > { %285 = vperm.xlu1 %546, %v274_v23  }
  0xf1   : > { %279 = vperm.xlu0 %545, %v272_v24   ;;  %v365_v24 = vstv %s491_s21 }
 0x110   : > { %317 = vadd.xlane.f32.xlu0 %v312_v30 }
 0x114   : > { %258 = vadd.xlane.f32.xlu1 %v554_v31 }
 0x125   : > { %288 = vperm.xlu1 %546, %v275_v32  }
 0x149   : > { %315 = vadd.xlane.f32.xlu1 %v311_v34 }
 0x14d   : > { %319 = vadd.xlane.f32.xlu1 %v313_v36 }
 0x151   : > { %321 = vadd.xlane.f32.xlu1 %v314_v38 }
 0x160   : > { %v253_v39 = vpop.xlane.xlu0 %252 }
 0x161   : > { %555 = vlog2.f32 %v253_v39 }
 0x164   : > { %v255_v40 = vpop.xlane.xlu1 %254  ;;  %v257_v41 = vpop.xlane.xlu0 %256 }
 0x165   : > { %557 = vlog2.f32 %v255_v40 }
 0x166   : > { %559 = vlog2.f32 %v257_v41 }
 0x168   : > { %v283_v51 = vpop.permute.xlu1 %282 }
 0x169   : > { %vm291_vm2 = vcmp.eq.s32.totalorder %v277_v45, %v283_v51 }
 0x16c   : > { %v280_v43 = vpop.permute.xlu0 %279  ;;  %v286_v60 = vpop.permute.xlu1 %285 }
 0x16d   : > { %vm290_vm1 = vcmp.eq.s32.totalorder %v277_v45, %v280_v43  ;;  %vm292_vm3 = vcmp.eq.s32.totalorder %v277_v45, %v286_v60 }
 0x16e   : > { %v556_v44 = vpop.eup %555 }
 0x16f   : > { %v261_v46 = vmul.f32 0.6931472, %v556_v44 }
 0x171   : > { %v268_v47 = vsub.f32 %v261_v46, %v240_v12 }
 0x172   : > { %v558_v48 = vpop.eup %557 }
 0x173   : > { %v560_v49 = vpop.eup %559  ;;  %v263_v50 = vmul.f32 0.6931472, %v558_v48  ;;  %v294_v52 = vsel %vm290_vm1, %v268_v47, 0.0  ;;  %v323_v58 = vmul.f32 %v311_v34, %v268_v47 }
 0x174   : > { %v265_v53 = vmul.f32 0.6931472, %v560_v49  ;;  %298 = vadd.xlane.f32.xlu0 %v294_v52 }
 0x175   : > { %v269_v54 = vsub.f32 %v263_v50, %v241_v17  ;;  %v361_v17 = vshrl.u32 %v276_v42, 7 }
 0x176   : > { %v270_v55 = vsub.f32 %v265_v53, %v782_v13 }
 0x177   : > { %v295_v56 = vsel %vm291_vm2, %v269_v54, 0.0  ;;  %v324_v59 = vmul.f32 %v312_v30, %v269_v54  ;;  %v362_v20 = vadd.s32 8, %v361_v17  ;;  %v363_v27 = vadd.s32 16, %v361_v17 }
 0x178   : > { %300 = vadd.xlane.f32.xlu1 %v295_v56  ;;  %v325_v57 = vmul.f32 %v313_v36, %v270_v55  ;;  %v296_v61 = vsel %vm292_vm3, %v270_v55, 0.0  ;;  %v366_v33 = vadd.s32 %v365_v24, %v361_v17 }
 0x179   : > { %v368_v37 = vadd.s32 %v365_v24, %v363_v27 }
 0x17a   : > { %331 = vadd.xlane.f32.xlu0 %v325_v57  ;;  %vm370_vm6 = vcmp.lt.s32.totalorder %v366_v33, 56 }
 0x17b   : > { %vm372_vm7 = vcmp.lt.s32.totalorder %v368_v37, 56 }
 0x17c   : > { %327 = vadd.xlane.f32.xlu1 %v323_v58 }
 0x180   : > { %329 = vadd.xlane.f32.xlu1 %v324_v59 }
 0x184   : > { %302 = vadd.xlane.f32.xlu1 %v296_v61 }
 0x199   : > { %v318_v8 = vpop.xlane.xlu0 %317 }
 0x19a   : > { %v336_v9 = vmax.f32 %v318_v8, 1e-30 }
 0x19d   : > { %v259_v62 = vpop.xlane.xlu1 %258 }
 0x19e   : > { %561 = vlog2.f32 %v259_v62  ;;  %v378_v62 = vld [vmem:[#allocation2] sm:$0x1] }
 0x19f   : > { %563 = vrcp.f32 %v336_v9 }
 0x1a1   : > { %v289_v1 = vpop.permute.xlu1 %288 }
 0x1a2   : > { %vm293_vm4 = vcmp.eq.s32.totalorder %v277_v45, %v289_v1 }
 0x1ab   : > { %v562_v63 = vpop.eup %561 }
 0x1ac   : > { %v267_v0 = vmul.f32 0.6931472, %v562_v63  ;;  %v564_v19 = vpop.eup %563 }
 0x1ae   : > { %v271_v2 = vsub.f32 %v267_v0, %v243_v26  ;;  %v367_v26 = vadd.s32 %v365_v24, %v362_v20 }
 0x1b0   : > { %v297_v3 = vsel %vm293_vm4, %v271_v2, 0.0  ;;  %v326_v4 = vmul.f32 %v314_v38, %v271_v2  ;;  %vm371_vm5 = vcmp.lt.s32.totalorder %v367_v26, 56  ;;  %v364_v38 = vadd.s32 24, %v361_v17 }
 0x1b1   : > { %304 = vadd.xlane.f32.xlu1 %v297_v3 }
 0x1b2   : > { %333 = vadd.xlane.f32.xlu0 %v326_v4  ;;  %v369_v44 = vadd.s32 %v365_v24, %v364_v38 }
 0x1b4   : > { %vm373_vm8 = vcmp.lt.s32.totalorder %v369_v44, 56 }
 0x1d2   : > { %v316_v5 = vpop.xlane.xlu1 %315 }
 0x1d3   : > { %v335_v11 = vmax.f32 %v316_v5, 1e-30 }
 0x1d5   : > { %565 = vrcp.f32 %v335_v11 }
 0x1d6   : > { %v320_v6 = vpop.xlane.xlu1 %319 }
 0x1d7   : > { %v337_v12 = vmax.f32 %v320_v6, 1e-30 }
 0x1d9   : > { %567 = vrcp.f32 %v337_v12 }
 0x1da   : > { %v322_v7 = vpop.xlane.xlu1 %321 }
 0x1db   : > { %v338_v16 = vmax.f32 %v322_v7, 1e-30 }
 0x1dd   : > { %569 = vrcp.f32 %v338_v16 }
 0x1e2   : > { %v566_v22 = vpop.eup %565 }
 0x1e6   : > { %v568_v32 = vpop.eup %567 }
 0x1ea   : > { %v570_v48 = vpop.eup %569 }
 0x1fd   : > { %v299_v14 = vpop.xlane.xlu0 %298 }
 0x1fe   : > { %v343_v34 = vmul.f32 0.9, %v299_v14 }
 0x201   : > { %v301_v10 = vpop.xlane.xlu1 %300 }
 0x202   : > { %v344_v29 = vmul.f32 0.9, %v301_v10 }
 0x203   : > { %v332_v23 = vpop.xlane.xlu0 %331 }
 0x204   : > { %v349_v30 = vmul.f32 0.1, %v332_v23 }
 0x205   : > { %v328_v13 = vpop.xlane.xlu1 %327 }
 0x206   : > { %v347_v21 = vmul.f32 0.1, %v328_v13  ;;  %v353_v39 = vmul.f32 %v568_v32, %v349_v30 }
 0x208   : > { %v351_v31 = vmul.f32 %v566_v22, %v347_v21 }
 0x209   : > { %v330_v15 = vpop.xlane.xlu1 %329 }
 0x20a   : > { %v348_v18 = vmul.f32 0.1, %v330_v15  ;;  %v355_v40 = vadd.f32 %v351_v31, %v343_v34 }
 0x20c   : > { %v352_v25 = vmul.f32 %v564_v19, %v348_v18  ;;  %v374_v46 = vsel %vm370_vm6, %v355_v40, 0.0 }
 0x20d   : > { %v303_v28 = vpop.xlane.xlu1 %302 }
 0x20e   : > { %v356_v35 = vadd.f32 %v352_v25, %v344_v29  ;;  %v345_v36 = vmul.f32 0.9, %v303_v28 }
 0x210   : > { %v375_v41 = vsel %vm371_vm5, %v356_v35, 0.0  ;;  %v357_v42 = vadd.f32 %v353_v39, %v345_v36 }
 0x211   : > { %v379_v49 = vadd.f32 %v375_v41, %v374_v46 }
 0x212   : > { %v376_v50 = vsel %vm372_vm7, %v357_v42, 0.0 }
 0x213   : > { %v380_v54 = vadd.f32 %v379_v49, %v376_v50 }
 0x23a   : > { %v305_v43 = vpop.xlane.xlu1 %304 }
 0x23b   : > { %v334_v45 = vpop.xlane.xlu0 %333  ;;  %v346_v51 = vmul.f32 0.9, %v305_v43 }
 0x23c   : > { %v350_v47 = vmul.f32 0.1, %v334_v45 }
 0x23e   : > { %v354_v52 = vmul.f32 %v570_v48, %v350_v47 }
 0x240   : > { %v358_v53 = vadd.f32 %v354_v52, %v346_v51 }
 0x242   : > { %v377_v55 = vsel %vm373_vm8, %v358_v53, 0.0 }
 0x243   : > { %v381_v56 = vadd.f32 %v380_v54, %v377_v55 }
 0x245   : > { %v382_v57 = vrot.slane %v381_v56, 4 }
 0x247   : > { %v383_v58 = vadd.f32 %v382_v57, %v381_v56 }
 0x249   : > { %v384_v59 = vrot.slane %v383_v58, 2 }
 0x24b   : > { %v385_v60 = vadd.f32 %v384_v59, %v383_v58 }
 0x24d   : > { %v386_v61 = vrot.slane %v385_v60, 1 }
 0x24f   : > { %v387_v63 = vadd.f32 %v386_v61, %v385_v60  ;;  %394 = sbr.rel (%p492_p10) target bundleno = 606 (0x25e), region = 44 }
 0x251   : > { %v388_v0 = vadd.f32 %v387_v63, %v378_v62 }
 0x253   : > { %390 = vst.msk [vmem:[#allocation2] sm:$0x1] %vm389_vm9, %v388_v0 }
 0x25a   : > { %v395_v1 = vld [vmem:[#allocation2] sm:$0x1] }
 0x25b   : > { %v396_v2 = vmul.f32 0.017857144, %v395_v1 }
 0x25d   : > { %397 = vst.msk [vmem:[#allocation6] sm:$0x1] %vm389_vm9, %v396_v2 }
 0x25e PF: > { %p508_p2 = scmp.eq.s32.totalorder %s706_s16, 1  ;;  %s666_s6 = smov [#allocation6]  }
 0x25f   : > { %s405_s7 = sshll.u32 %s666_s6, 4  ;;  %s406_s7 = int_to_ptr.vmem [resolvable:$true] %s405_s7 }
 0x260   : > { %s599_s8 = scalar_lea.vmem %s406_s7, 16  ;;  %s605_s9 = scalar_lea.vmem %s406_s7, 32 }
 0x261   : > { %p600_p3 = scmp.ne.s32.totalorder %s406_s7, %s599_s8  ;;  %p606_p6 = scmp.lt.s32.totalorder %s406_s7, %s406_s7 }
 0x262   : > { %p607_p11 = scmp.lt.s32.totalorder %s605_s9, %s599_s8 }
 0x263   : > { %p601_p4 = pnand %p600_p3, %p508_p2 }
 0x264   : > { %p608_p13 = por %p607_p11, %p606_p6 }
 0x265   : > { %p602_p5 = pneg %p601_p4 }
 0x267   : > { %p609_p0 = pnand %p608_p13, %p602_p5 }
 0x269   : > { %612 = shalt.err (!%p609_p0)
}
 0x26a   : > { %500 = dma.vmem_to_hbm [thread:$0]  (%p508_p2), %s406_s7, 16, %s822_s3, [#allocation5]  }
 0x26b   : > { %644 = dma.done.wait (%p508_p2), [#allocation5], 16  }
 0x26c   : > { %646 = vsyncadd (%p508_p2), [#allocation5], 4294967280 }
 0x26d PF: > { %p14_p1 = scmp.ge.s32.totalorder %s709_s17, 4   ;;  %s829_s12 = smov %s653_s13 }
 0x26e   : > { %s830_s13 = smov %s657_s14  ;;  %s831_s14 = smov %s719_s20 }
 0x26f   : > { %s832_s15 = smov %s709_s17  ;;  %16 = sbr.rel (!%p14_p1) target bundleno = 4 (0x4), region = 83 }
 0x274   :  { %418 = vsyncpa [#allocation4], 1 }
 0x275   :  { %420 = vsyncpa [#allocation4 + $0x1], 1 }
 0x276   :  { %421 = vsyncpa [#allocation5], 1 }
 0x277   :  { %423 = vsyncpa [#allocation5 + $0x1], 1 }

</bundles_post_ra>
